<compile_context>
chip_gen: v7x
topology: tpu7x:2x2x1
jax: 0.10.0
libtpu: 0.0.40
codegen_flags: <defaults>
</compile_context>

<pallas_src>
import jax
import jax.numpy as jnp
from jax.experimental import pallas as pl
from jax.experimental.pallas import tpu as pltpu


def _round_up(n, m):
    return ((n + m - 1) // m) * m


def _vmem_capacity_bytes():
    """Physical VMEM of the local TPU generation (conservative fallback)."""
    try:
        info = pltpu.get_tpu_info()
        cap = getattr(info, "vmem_capacity_bytes", None)
        if cap:
            return int(cap)
    except Exception:
        pass
    return 64 * 1024 * 1024  # v7x-sized fallback: safe on every generation


def _pick_tile_f(d_ff, target):
    """Largest multiple-of-128 divisor of d_ff that is <= target (or full d_ff)."""
    if d_ff <= target:
        return d_ff
    if d_ff % 128 != 0:
        return d_ff  # awkward d_ff: keep the full dim (rare, small models)
    best = 128
    t = 256
    while t <= target:
        if d_ff % t == 0:
            best = t
        t += 128
    return best


def _estimate_vmem(tile_m, tile_f, d_model, d_ff, xb, wb, ob):
    """Double-buffered pipeline footprint in bytes (no headroom factor)."""
    n_f = d_ff // tile_f if d_ff % tile_f == 0 else 1
    est = (2 * tile_m * d_model * xb        # x tiles (double-buffered)
           + 2 * d_model * tile_f * wb      # W1 tiles
           + 2 * tile_f * 4                 # b1 (f32)
           + 2 * tile_f * d_model * wb      # W2 tiles
           + 2 * d_model * 4                # b2 (f32)
           + 2 * tile_m * d_model * ob      # out tiles
           + tile_m * tile_f * 4)           # live hidden chunk
    if n_f > 1:
        est += tile_m * d_model * 4         # f32 accumulator scratch
    return est


# --------------------------- kernels ---------------------------------------


def ffn_kernel_single(x_ref, w1_ref, b1_ref, w2_ref, b2_ref, o_ref):
    """Fast path: full d_ff in one tile -> no accumulator scratch."""
    h = jnp.dot(x_ref[...], w1_ref[...], preferred_element_type=jnp.float32)
    h = jnp.maximum(h + b1_ref[...], 0.0)
    y = jnp.dot(h.astype(w2_ref.dtype), w2_ref[...],
                preferred_element_type=jnp.float32)
    o_ref[...] = (y + b2_ref[...]).astype(o_ref.dtype)


def ffn_kernel_reduce(x_ref, w1_ref, b1_ref, w2_ref, b2_ref, o_ref, acc_ref):
    """Reduction over d_ff tiles with an f32 VMEM accumulator."""
    kf = pl.program_id(1)

    h = jnp.dot(x_ref[...], w1_ref[...], preferred_element_type=jnp.float32)
    h = jnp.maximum(h + b1_ref[...], 0.0)
    partial = jnp.dot(h.astype(w2_ref.dtype), w2_ref[...],
                      preferred_element_type=jnp.float32)

    @pl.when(kf == 0)
    def _first():
        acc_ref[...] = partial          # direct write: no zero-fill + RMW

    @pl.when(kf > 0)
    def _rest():
        acc_ref[...] += partial

    @pl.when(kf == pl.num_programs(1) - 1)
    def _finalize():
        o_ref[...] = (acc_ref[...] + b2_ref[...]).astype(o_ref.dtype)


# --------------------------- wrapper ----------------------------------------


def positionwise_feed_forward(x, w1, b1, w2, b2, *, tile_m=None, tile_f=None,
                              vmem_limit_bytes=None):
    """x: (batch, seq, d_model); w1: (d_model, d_ff); b1: (d_ff,);
    w2: (d_ff, d_model); b2: (d_model,). Weights may be bf16 (recommended)."""
    B, S, d_model = x.shape
    d_ff = w1.shape[1]
    M = B * S

    out_dtype = x.dtype
    compute_dtype = w1.dtype                 # run the MXU in the weight dtype
    xb = jnp.dtype(compute_dtype).itemsize
    wb = jnp.dtype(w1.dtype).itemsize
    ob = jnp.dtype(out_dtype).itemsize

    # ---- generation-aware VMEM budget -------------------------------------
    capacity = _vmem_capacity_bytes()
    cap = min(capacity * 7 // 8, 112 * 1024 * 1024)  # ~56 MiB v7x, ~112 MiB v5e/v6e
    big_vmem = capacity >= 96 * 1024 * 1024

    # ---- tile defaults -----------------------------------------------------
    if tile_m is None:
        tile_m = 1024 if big_vmem else 512
    tile_m = max(8, _round_up(int(tile_m), 8))
    tile_m = min(tile_m, _round_up(M, 8))

    if tile_f is None:
        tile_f = _pick_tile_f(d_ff, 2048 if big_vmem else 1024)
    elif d_ff % tile_f != 0 or (tile_f != d_ff and tile_f % 128 != 0):
        tile_f = _pick_tile_f(d_ff, 2048 if big_vmem else 1024)

    # ---- shrink tiles until the double-buffered footprint fits ------------
    def _fits(tm, tf):
        return int(_estimate_vmem(tm, tf, d_model, d_ff, xb, wb, ob) * 1.3) <= cap

    while not _fits(tile_m, tile_f) and d_ff % 128 == 0 and tile_f > 128:
        nf = tile_f - 128                    # next smaller multiple-of-128 divisor
        while nf >= 128 and d_ff % nf != 0:
            nf -= 128
        if nf < 128:
            break
        tile_f = nf
    while not _fits(tile_m, tile_f) and tile_m > 8:
        tile_m = max(8, _round_up(tile_m // 2, 8))

    m_pad = _round_up(M, tile_m)
    m_tiles = m_pad // tile_m
    f_tiles = d_ff // tile_f if d_ff % tile_f == 0 else 1
    if f_tiles == 1:
        tile_f = d_ff

    if vmem_limit_bytes is None:
        est = _estimate_vmem(tile_m, tile_f, d_model, d_ff, xb, wb, ob)
        vmem_limit_bytes = min(cap, max(int(est * 1.3), 32 * 1024 * 1024))

    # ---- operand prep ------------------------------------------------------
    x2 = x.reshape(M, d_model)
    if x2.dtype != compute_dtype:
        x2 = x2.astype(compute_dtype)        # end-to-end low-precision MXU path
    if m_pad != M:
        x2 = jnp.pad(x2, ((0, m_pad - M), (0, 0)))
    b1_2 = b1.astype(jnp.float32).reshape(1, d_ff)
    b2_2 = b2.astype(jnp.float32).reshape(1, d_model)

    # Only shard M across TensorCores when there are >= 2 M-tiles; otherwise
    # "arbitrary" avoids doubling weight re-streaming for no parallel win.
    m_sem = "parallel" if m_tiles >= 2 else "arbitrary"

    if f_tiles == 1:
        # ---------------- single d_ff tile fast path ------------------------
        out2 = pl.pallas_call(
            ffn_kernel_single,
            out_shape=jax.ShapeDtypeStruct((m_pad, d_model), out_dtype),
            grid_spec=pltpu.PrefetchScalarGridSpec(
                num_scalar_prefetch=0,
                grid=(m_tiles,),
                in_specs=[
                    pl.BlockSpec((tile_m, d_model), lambda i: (i, 0)),   # x
                    pl.BlockSpec((d_model, d_ff), lambda i: (0, 0)),     # W1
                    pl.BlockSpec((1, d_ff), lambda i: (0, 0)),           # b1
                    pl.BlockSpec((d_ff, d_model), lambda i: (0, 0)),     # W2
                    pl.BlockSpec((1, d_model), lambda i: (0, 0)),        # b2
                ],
                out_specs=pl.BlockSpec((tile_m, d_model), lambda i: (i, 0)),
            ),
            compiler_params=pltpu.CompilerParams(
                dimension_semantics=(m_sem,),
                vmem_limit_bytes=vmem_limit_bytes,
            ),
        )(x2, w1, b1_2, w2, b2_2)
    else:
        # ---------------- d_ff reduction path --------------------------------
        out2 = pl.pallas_call(
            ffn_kernel_reduce,
            out_shape=jax.ShapeDtypeStruct((m_pad, d_model), out_dtype),
            grid_spec=pltpu.PrefetchScalarGridSpec(
                num_scalar_prefetch=0,
                grid=(m_tiles, f_tiles),
                in_specs=[
                    pl.BlockSpec((tile_m, d_model), lambda i, kf: (i, 0)),   # x
                    pl.BlockSpec((d_model, tile_f), lambda i, kf: (0, kf)),  # W1
                    pl.BlockSpec((1, tile_f), lambda i, kf: (0, kf)),        # b1
                    pl.BlockSpec((tile_f, d_model), lambda i, kf: (kf, 0)),  # W2
                    pl.BlockSpec((1, d_model), lambda i, kf: (0, 0)),        # b2
                ],
                out_specs=pl.BlockSpec((tile_m, d_model), lambda i, kf: (i, 0)),
                scratch_shapes=[pltpu.VMEM((tile_m, d_model), jnp.float32)],
            ),
            compiler_params=pltpu.CompilerParams(
                dimension_semantics=(m_sem, "arbitrary"),
                vmem_limit_bytes=vmem_limit_bytes,
            ),
        )(x2, w1, b1_2, w2, b2_2)

    if m_pad != M:
        out2 = out2[:M]
    return out2.reshape(B, S, d_model)


# --------------------------- test harness -----------------------------------


def _init_params(key, d_model, d_ff, dtype=jnp.float32):
    # Deterministic init mimicking nn.Linear's uniform(-1/sqrt(fan_in), +).
    k1, k2, k3, k4 = jax.random.split(key, 4)
    lim1 = 1.0 / (d_model ** 0.5)
    lim2 = 1.0 / (d_ff ** 0.5)
    # Stored pre-transposed: W1 (d_model, d_ff), W2 (d_ff, d_model)
    w1 = jax.random.uniform(k1, (d_model, d_ff), jnp.float32, -lim1, lim1).astype(dtype)
    b1 = jax.random.uniform(k2, (d_ff,), jnp.float32, -lim1, lim1).astype(dtype)
    w2 = jax.random.uniform(k3, (d_ff, d_model), jnp.float32, -lim2, lim2).astype(dtype)
    b2 = jax.random.uniform(k4, (d_model,), jnp.float32, -lim2, lim2).astype(dtype)
    return w1, b1, w2, b2


def _reference(x, w1, b1, w2, b2):
    xf = x.astype(jnp.float32)
    return (jnp.maximum(xf @ w1.astype(jnp.float32) + b1.astype(jnp.float32), 0.0)
            @ w2.astype(jnp.float32) + b2.astype(jnp.float32))


if __name__ == "__main__":
    key = jax.random.PRNGKey(0)
    k1, k2, k3, k4, k5, k6 = jax.random.split(key, 6)

    # Test 1: tiny shapes matching the module spec — single d_ff tile fast path.
    batch, seq, d_model, d_ff = 2, 8, 32, 64
    x = jax.random.normal(k1, (batch, seq, d_model), jnp.float32)
    w1, b1, w2, b2 = _init_params(k2, d_model, d_ff)
    y = jax.block_until_ready(positionwise_feed_forward(x, w1, b1, w2, b2))
    ref = _reference(x, w1, b1, w2, b2)
    assert y.shape == (batch, seq, d_model)
    assert jnp.allclose(y, ref, atol=1e-4, rtol=1e-4)

    # Test 2: exercise M padding (M=15 -> 16), multi-tile M, and the d_ff
    # reduction path (grid = (2, 2)) with the direct-write f32 accumulator.
    batch2, seq2, d_model2, d_ff2 = 3, 5, 128, 256
    x2 = jax.random.normal(k3, (batch2, seq2, d_model2), jnp.float32)
    w1b, b1b, w2b, b2b = _init_params(k4, d_model2, d_ff2)
    y2 = jax.block_until_ready(
        positionwise_feed_forward(x2, w1b, b1b, w2b, b2b, tile_m=8, tile_f=128))
    ref2 = _reference(x2, w1b, b1b, w2b, b2b)
    assert y2.shape == (batch2, seq2, d_model2)
    assert jnp.allclose(y2, ref2, atol=1e-4, rtol=1e-4)

    # Test 3: bf16 weights + f32 input — exercises the end-to-end bf16 MXU
    # path (wrapper casts x to the weight dtype; f32 accumulation).
    batch3, seq3, d_model3, d_ff3 = 2, 16, 64, 128
    x3 = jax.random.normal(k5, (batch3, seq3, d_model3), jnp.float32)
    w1c, b1c, w2c, b2c = _init_params(k6, d_model3, d_ff3, dtype=jnp.bfloat16)
    y3 = jax.block_until_ready(positionwise_feed_forward(x3, w1c, b1c, w2c, b2c))
    ref3 = _reference(x3, w1c, b1c, w2c, b2c)
    assert y3.shape == (batch3, seq3, d_model3)
    assert jnp.allclose(y3.astype(jnp.float32), ref3, atol=5e-2, rtol=5e-2)

    print("KERNEL_OK")
</pallas_src>

<mosaic_0001>
module attributes {stable_mosaic.version = 11 : i64} {
  func.func @ffn_kernel_single(%arg0: i32, %arg1: memref<16x32xf32, #tpu.memory_space<vmem>>, %arg2: memref<32x64xf32, #tpu.memory_space<vmem>>, %arg3: memref<1x64xf32, #tpu.memory_space<vmem>>, %arg4: memref<64x32xf32, #tpu.memory_space<vmem>>, %arg5: memref<1x32xf32, #tpu.memory_space<vmem>>, %arg6: memref<16x32xf32, #tpu.memory_space<vmem>>) attributes {dimension_semantics = [#tpu.dimension_semantics<arbitrary>], iteration_bounds = array<i64: 1>, scalar_prefetch = 0 : i64, scratch_operands = 0 : i64, tpu.core_type = #tpu.core_type<tc>, window_params = [{transform_indices = @transform_0, window_bounds = array<i64: 16, 32>}, {pipeline_mode = #tpu.pipeline_mode<synchronous>, transform_indices = @transform_1, window_bounds = array<i64: 32, 64>}, {pipeline_mode = #tpu.pipeline_mode<synchronous>, transform_indices = @transform_2, window_bounds = array<i64: 1, 64>}, {pipeline_mode = #tpu.pipeline_mode<synchronous>, transform_indices = @transform_3, window_bounds = array<i64: 64, 32>}, {pipeline_mode = #tpu.pipeline_mode<synchronous>, transform_indices = @transform_4, window_bounds = array<i64: 1, 32>}, {transform_indices = @transform_5, window_bounds = array<i64: 16, 32>}]} {
    %c0 = arith.constant 0 : index
    %c0_0 = arith.constant 0 : index
    %0 = vector.load %arg1[%c0, %c0_0] : memref<16x32xf32, #tpu.memory_space<vmem>>, vector<16x32xf32>
    %c0_1 = arith.constant 0 : index
    %c0_2 = arith.constant 0 : index
    %1 = vector.load %arg2[%c0_1, %c0_2] : memref<32x64xf32, #tpu.memory_space<vmem>>, vector<32x64xf32>
    %cst = arith.constant dense<0.000000e+00> : vector<16x64xf32>
    %2 = tpu.matmul %0, %1, %cst {dimension_numbers = #tpu.dot_dimension_numbers<[1], [0], [0], [1], [0, 0, 1, 1], [], []>} : vector<16x32xf32>, vector<32x64xf32>, vector<16x64xf32> -> vector<16x64xf32>
    %c0_3 = arith.constant 0 : index
    %c0_4 = arith.constant 0 : index
    %3 = vector.load %arg3[%c0_3, %c0_4] : memref<1x64xf32, #tpu.memory_space<vmem>>, vector<1x64xf32>
    %4 = vector.broadcast %3 : vector<1x64xf32> to vector<16x64xf32>
    %5 = arith.addf %2, %4 : vector<16x64xf32>
    %cst_5 = arith.constant 0.000000e+00 : f32
    %6 = vector.broadcast %cst_5 : f32 to vector<16x64xf32>
    %7 = arith.maximumf %5, %6 : vector<16x64xf32>
    %c0_6 = arith.constant 0 : index
    %c0_7 = arith.constant 0 : index
    %8 = vector.load %arg4[%c0_6, %c0_7] : memref<64x32xf32, #tpu.memory_space<vmem>>, vector<64x32xf32>
    %cst_8 = arith.constant dense<0.000000e+00> : vector<16x32xf32>
    %9 = tpu.matmul %7, %8, %cst_8 {dimension_numbers = #tpu.dot_dimension_numbers<[1], [0], [0], [1], [0, 0, 1, 1], [], []>} : vector<16x64xf32>, vector<64x32xf32>, vector<16x32xf32> -> vector<16x32xf32>
    %c0_9 = arith.constant 0 : index
    %c0_10 = arith.constant 0 : index
    %10 = vector.load %arg5[%c0_9, %c0_10] : memref<1x32xf32, #tpu.memory_space<vmem>>, vector<1x32xf32>
    %11 = vector.broadcast %10 : vector<1x32xf32> to vector<16x32xf32>
    %12 = arith.addf %9, %11 : vector<16x32xf32>
    %c0_11 = arith.constant 0 : index
    %c0_12 = arith.constant 0 : index
    %13 = vector.load %arg6[%c0_11, %c0_12] : memref<16x32xf32, #tpu.memory_space<vmem>>, vector<16x32xf32>
    tpu.vector_store %arg6[%c0_11, %c0_12], %12 {strides = array<i32>} : memref<16x32xf32, #tpu.memory_space<vmem>>, vector<16x32xf32>,
    return
  }
  func.func @transform_0(%arg0: i32) -> (i32, i32) {
    %c0_i32 = arith.constant 0 : i32
    %c0_i32_0 = arith.constant 0 : i32
    return %arg0, %c0_i32 : i32, i32
  }
  func.func @transform_1(%arg0: i32) -> (i32, i32) {
    %c0_i32 = arith.constant 0 : i32
    %c0_i32_0 = arith.constant 0 : i32
    %c0_i32_1 = arith.constant 0 : i32
    return %c0_i32, %c0_i32_0 : i32, i32
  }
  func.func @transform_2(%arg0: i32) -> (i32, i32) {
    %c0_i32 = arith.constant 0 : i32
    %c0_i32_0 = arith.constant 0 : i32
    %c0_i32_1 = arith.constant 0 : i32
    return %c0_i32, %c0_i32_0 : i32, i32
  }
  func.func @transform_3(%arg0: i32) -> (i32, i32) {
    %c0_i32 = arith.constant 0 : i32
    %c0_i32_0 = arith.constant 0 : i32
    %c0_i32_1 = arith.constant 0 : i32
    return %c0_i32, %c0_i32_0 : i32, i32
  }
  func.func @transform_4(%arg0: i32) -> (i32, i32) {
    %c0_i32 = arith.constant 0 : i32
    %c0_i32_0 = arith.constant 0 : i32
    %c0_i32_1 = arith.constant 0 : i32
    return %c0_i32, %c0_i32_0 : i32, i32
  }
  func.func @transform_5(%arg0: i32) -> (i32, i32) {
    %c0_i32 = arith.constant 0 : i32
    %c0_i32_0 = arith.constant 0 : i32
    return %arg0, %c0_i32 : i32, i32
  }
}

</mosaic_0001>

<bundles_post_ra>
// kernel: tpu_custom_call.1
= control target key start
LH: loop header
LB: loop body
LE: loop exit
PB: predicated region body
PF: predicated region fallthrough
CT: control target
= control target key end

     0   :  { %vm34_vm0 = vcmask 261120   ;;  %s433_s0 = inlined_call_operand.vmem [shape: f32[16,32], index: 0, kind: input, shape index: {}]   ;;  %s434_s1 = inlined_call_operand.vmem [shape: f32[32,64], index: 1, kind: input, shape index: {}]   ;;  %s435_s2 = inlined_call_operand.vmem [shape: f32[1,64], index: 2, kind: input, shape index: {}]   ;;  %s436_s3 = inlined_call_operand.vmem [shape: f32[64,32], index: 3, kind: input, shape index: {}]   ;;  %s437_s4 = inlined_call_operand.vmem [shape: f32[1,32], index: 4, kind: input, shape index: {}]   ;;  %s438_s5 = inlined_call_operand.hbm [shape: f32[16,32], index: 5, kind: output, shape index: {}]  }
   0x1   :  { %v23_v0 = vld [vmem:[%s434_s1] sm:$0xff]  ;;  %v24_v1 = vld [vmem:[%s434_s1 + $0x8] sm:$0xff]  ;;  %v25_v2 = vld [vmem:[%s434_s1 + $0x10] sm:$0xff] }
   0x2   :  { %v285_v3 = vpack.c.bf16 %v24_v1, %v23_v0  ;;  %v26_v4 = vld [vmem:[%s434_s1 + $0x18] sm:$0xff]  ;;  %v21_v5 = vld [vmem:[%s433_s0] sm:$0xff]  ;;  %v119_v8 = vld [vmem:[%s436_s3 + $0x8] sm:$0xff] }
   0x3   :  { %v289_v6 = vpack.c.bf16 %v26_v4, %v25_v2  ;;  %263 = vmatprep.mubr.msk.f32.mxu0 %vm34_vm0, %v21_v5  ;;  %v118_v7 = vld [vmem:[%s436_s3] sm:$0xff]  ;;  %v120_v9 = vld [vmem:[%s436_s3 + $0x10] sm:$0xff]  ;;  %v121_v11 = vld [vmem:[%s436_s3 + $0x18] sm:$0xff] }
   0x4   :  { %286 = vmatprep.subr.bf16.mxu0 %v285_v3  ;;  %v293_v10 = vpack.c.bf16 %v119_v8, %v118_v7  ;;  %v297_v12 = vpack.c.bf16 %v121_v11, %v120_v9  ;;  %v122_v13 = vld [vmem:[%s436_s3 + $0x20] sm:$0xff]  ;;  %v123_v14 = vld [vmem:[%s436_s3 + $0x28] sm:$0xff] }
   0x5   :  { %288 = vmatpush3.bf16.msra.mxu0 %v285_v3 }
   0x6   :  { %10 = vsyncpa [#allocation3], 0  ;;  %290 = vmatprep.subr.bf16.mxu0 %v289_v6  ;;  %294 = vmatprep.subr.bf16.mxu1 %v293_v10  ;;  %v301_v15 = vpack.c.bf16 %v123_v14, %v122_v13  ;;  %v22_v16 = vld [vmem:[%s433_s0 + $0x8] sm:$0xff]  ;;  %v124_v17 = vld [vmem:[%s436_s3 + $0x30] sm:$0xff]  ;;  %vm133_vm1 = vcmask 523264  }
   0x7   :  { %296 = vmatpush3.bf16.msra.mxu1 %v293_v10  ;;  %v125_v18 = vld [vmem:[%s436_s3 + $0x38] sm:$0xff]  ;;  %v233_v20 = vld [vmem:[%s435_s2] ss:$0 sm:$0xff]  ;;  %s336_s3 = smov [#allocation2]  }
   0x8   :  { %298 = vmatprep.subr.bf16.mxu1 %v297_v12  ;;  %v305_v19 = vpack.c.bf16 %v125_v18, %v124_v17  ;;  %v236_v27 = vld [vmem:[%s437_s4] ss:$0 sm:$0xff]  ;;  %s222_s23 = sshll.u32 %s336_s3, 4  ;;  %s223_s23 = int_to_ptr.vmem [resolvable:$true] %s222_s23 }
   0x9   :  { %292 = vmatpush3.bf16.msra.mxu0 %v289_v6  ;;  %s312_s2 = scalar_lea.vmem %s223_s23, 256  ;;  %p317_p1 = scmp.lt.s32.totalorder %s223_s23, %s223_s23 }
   0xa   :  { %p313_p0 = scmp.ne.s32.totalorder %s223_s23, %s312_s2  ;;  %p318_p2 = scmp.lt.s32.totalorder %s312_s2, %s312_s2 }
   0xb   :  { %300 = vmatpush3.bf16.msra.mxu1 %v297_v12 }
   0xc   :  { %264 = vmatmul.mubr.msk.f32.vlgmr.msra.gmra.mrb[0].mxu0 %vm34_vm0, %v22_v16  ;;  %302 = vmatprep.subr.bf16.mxu1 %v301_v15  ;;  %p319_p3 = por %p318_p2, %p317_p1 }
   0xe   :  { %p320_p4 = pnand %p319_p3, %p313_p0 }
   0xf   :  { %304 = vmatpush3.bf16.msra.mxu1 %v301_v15 }
  0x10   :  { %306 = vmatprep.subr.bf16.mxu1 %v305_v19 }
  0x13   :  { %308 = vmatpush3.bf16.msra.mxu1 %v305_v19 }
  0xdf   :  { %v265_v21 = vpop.f32.mrb[0].mxu0 }
  0xe0   :  { %v113_v22 = vadd.f32 %v265_v21, %v233_v20  ;;  %v107_v23 = vpop.f32.mrb[1].mxu0 }
  0xe1   :  { %v108_v24 = vadd.f32 %v233_v20, %v107_v23 }
  0xe2   :  { %v117_v26 = vmax.f32 %v113_v22, 0.0 }
  0xe3   :  { %v116_v25 = vmax.f32 %v108_v24, 0.0 }
  0xe5   :  { %282 = vmatprep.mubr.msk.f32.mxu1 %vm133_vm1, %v116_v25 }
  0xe6   :  { %283 = vmatmul.mubr.msk.f32.vlgmr.msra.gmra.mrb[0].mxu1 %vm133_vm1, %v117_v26 }
 0x1b9   :  { %v284_v28 = vpop.f32.mrb[0].mxu1 }
 0x1ba   :  { %v212_v29 = vadd.f32 %v284_v28, %v236_v27  ;;  %v206_v30 = vpop.f32.mrb[1].mxu1 }
 0x1bb   :  { %v207_v31 = vadd.f32 %v236_v27, %v206_v30 }
 0x1bc   :  { %216 = vst.msk [vmem:[#allocation2 + $0x8] sm:$0xff] %vm34_vm0, %v212_v29 }
 0x1bd   :  { %215 = vst.msk [vmem:[#allocation2] sm:$0xff] %vm34_vm0, %v207_v31 }
 0x1be   :  { %323 = shalt.err (!%p320_p4)
}
 0x1bf   :  { %s324_s25 = scalar_lea.hbm %s438_s5, 256 }
 0x1c0   :  { %p325_p5 = scmp.ne.s32.totalorder %s438_s5, %s324_s25  ;;  %p328_p6 = scmp.lt.u32.totalorder %s324_s25, %s438_s5 }
 0x1c2   :  { %p330_p7 = pnand %p328_p6, %p325_p5 }
 0x1c4   :  { %333 = shalt.err (!%p330_p7)
}
 0x1c5   :  { %s337_s30 = smov 128   ;;  %s338_s6 = smov 8  }
 0x1c6   :  { %228 = dma.vmem_to_hbm [thread:$0]  %s223_s23, 256, %s438_s5, [#allocation3], %s337_s30, %s337_s30, %s338_s6  }
 0x1c7   :  { %334 = dma.done.wait [#allocation3], 256  }
 0x1c8   :  { %335 = vsyncadd [#allocation3], 4294967040 }
 0x1c9   :  { %232 = vsyncpa [#allocation3], 1 }

</bundles_post_ra>
